<compile_context>
chip_gen: v6e
topology: v6e:2x2x1
jax: 0.10.0
libtpu: 0.0.40
codegen_flags: <defaults>
</compile_context>

<pallas_src>
import functools

import jax
import jax.numpy as jnp
from jax.experimental import pallas as pl
from jax.experimental.pallas import tpu as pltpu


_ROW_STEP = 16       # row-tile granularity (bf16 sublane tile)
_MAX_TM = 512        # ~512-row tiles already reach ~85% of HBM roofline
_TARGET_STEPS = 4    # prefer >= 4 grid steps so the pipeline can overlap


def _proj_kernel(x_ref, w_ref, b_ref, o_ref):
    # x_ref: (tm, K) bf16, w_ref: (K, tn) bf16, b_ref: (1, tn) f32,
    # o_ref: (tm, tn) out_dtype.  tn is a multiple of 128 => unmasked,
    # lane-dense output stores.  Accumulation is f32 on the MXU.
    acc = jnp.dot(x_ref[...], w_ref[...], preferred_element_type=jnp.float32)
    o_ref[...] = (acc + b_ref[...]).astype(o_ref.dtype)


def _vmem_budgets():
    """(per-step tile budget, scoped vmem limit cap), generation-aware."""
    cap = None
    try:
        info = pltpu.get_tpu_info()
        cap = getattr(info, "vmem_capacity_bytes", None)
    except Exception:
        cap = None
    if not cap:
        cap = 64 << 20  # conservative: assume v7x-class (64 MiB) part
    cap = int(cap)
    if cap >= (100 << 20):       # 128 MiB class: v5e / v6e
        return 88 << 20, 100 << 20
    # 64 MiB class (v7x): leave explicit headroom for Mosaic internal scratch.
    return 36 << 20, 52 << 20


def _choose_tm(M, cap_rows):
    """Multiple-of-16 divisor of M, <= min(cap_rows, 512), preferring >= 4 steps."""
    cap = min(int(cap_rows), _MAX_TM,
              ((M + _ROW_STEP - 1) // _ROW_STEP) * _ROW_STEP)
    cap = max(_ROW_STEP, (cap // _ROW_STEP) * _ROW_STEP)
    divisors = [t for t in range(_ROW_STEP, min(cap, M) + 1, _ROW_STEP)
                if M % t == 0]
    for min_steps in (_TARGET_STEPS, 2, 1):
        cands = [t for t in divisors if M // t >= min_steps]
        if cands:
            return max(cands)
    # No exact multiple-of-16 divisor under the cap: padded last tile fallback.
    return cap


def _choose_tn(N_pad, K, budget):
    """Largest multiple-of-128 divisor of N_pad whose 2x weight tile fits budget."""
    nblk = N_pad // 128
    best = 128
    for d in range(1, nblk + 1):
        if nblk % d:
            continue
        tn = 128 * d
        if 2 * K * tn * 2 + 2 * tn * 4 <= budget:
            best = tn
    return best


def _patch_proj(patches, weight, bias, out_dtype):
    """patches (M,K) bf16 @ weight (K,N) bf16 + bias (N,) f32 -> (M,N) out_dtype."""
    M, K = patches.shape
    N = weight.shape[1]

    # Lane-dense output: pad N up to a multiple of 128 (tiny one-time pad on
    # the weight/bias; avoids masked partial stores on the output path).
    N_pad = ((N + 127) // 128) * 128
    if N_pad != N:
        weight = jnp.pad(weight, ((0, 0), (0, N_pad - N)))
        bias = jnp.pad(bias, ((0, N_pad - N),))
    bias2d = bias.reshape(1, N_pad).astype(jnp.float32)

    tile_budget, limit_cap = _vmem_budgets()
    in_b = 2                                   # bf16 activations / weight
    out_b = jnp.dtype(out_dtype).itemsize      # f32 (default) or bf16 output
    weight_bytes = K * N_pad * in_b
    bias_bytes = N_pad * 4

    weight_resident = (weight_bytes + bias_bytes) <= tile_budget // 2

    if weight_resident:
        # 1-D grid over M; weight + bias DMA'd once and stay VMEM-resident.
        per_row = 2 * K * in_b + 2 * N_pad * out_b     # double-buffered in/out
        row_budget = max(tile_budget - weight_bytes - bias_bytes, 8 * per_row)
        tm = _choose_tm(M, row_budget // per_row)
        M_pad = ((M + tm - 1) // tm) * tm
        if M_pad != M:    # fallback only; typical M has an exact divisor
            patches = jnp.pad(patches, ((0, M_pad - M), (0, 0)))
        grid = (M_pad // tm,)
        in_specs = [
            pl.BlockSpec((tm, K), lambda i: (i, 0)),
            pl.BlockSpec((K, N_pad), lambda i: (0, 0)),    # resident weight
            pl.BlockSpec((1, N_pad), lambda i: (0, 0)),    # resident bias
        ]
        out_specs = pl.BlockSpec((tm, N_pad), lambda i: (i, 0))
        dims = ("parallel",)
        n_reads_of_act = 1
        vmem_needed = (weight_bytes + bias_bytes
                       + 2 * tm * K * in_b + 2 * tm * N_pad * out_b)
    else:
        # Tiled-weight fallback: 2-D grid (N outer so each weight tile is
        # DMA'd exactly once); activations re-read once per N tile.
        tn = _choose_tn(N_pad, K, tile_budget // 2)
        per_row = 2 * K * in_b + 2 * tn * out_b
        row_budget = max(tile_budget - 2 * K * tn * in_b - 2 * tn * 4,
                         8 * per_row)
        tm = _choose_tm(M, row_budget // per_row)
        M_pad = ((M + tm - 1) // tm) * tm
        if M_pad != M:
            patches = jnp.pad(patches, ((0, M_pad - M), (0, 0)))
        grid = (N_pad // tn, M_pad // tm)
        in_specs = [
            pl.BlockSpec((tm, K), lambda j, i: (i, 0)),
            pl.BlockSpec((K, tn), lambda j, i: (0, j)),
            pl.BlockSpec((1, tn), lambda j, i: (0, j)),
        ]
        out_specs = pl.BlockSpec((tm, tn), lambda j, i: (i, j))
        dims = ("parallel", "parallel")
        n_reads_of_act = N_pad // tn
        vmem_needed = (2 * K * tn * in_b + 2 * tn * 4
                       + 2 * tm * K * in_b + 2 * tm * tn * out_b)

    vmem_limit = int(min(max(vmem_needed + (8 << 20), 24 << 20), limit_cap))

    cost = pl.CostEstimate(
        flops=2 * M_pad * K * N_pad,
        transcendentals=0,
        bytes_accessed=(M_pad * K * in_b * n_reads_of_act
                        + weight_bytes + bias_bytes
                        + M_pad * N_pad * out_b))

    out = pl.pallas_call(
        _proj_kernel,
        out_shape=jax.ShapeDtypeStruct((M_pad, N_pad), out_dtype),
        grid_spec=pltpu.PrefetchScalarGridSpec(
            num_scalar_prefetch=0,
            grid=grid,
            in_specs=in_specs,
            out_specs=out_specs,
        ),
        compiler_params=pltpu.CompilerParams(
            dimension_semantics=dims,
            vmem_limit_bytes=vmem_limit,
            # Keep the strided 8-D patchify transpose OUT of the pallas input
            # path (operand 0 stays a single contiguous (tm, K) read); fuse
            # only the tiny weight/bias prep.
            allow_input_fusion=[False, True, True]),
        cost_estimate=cost,
    )(patches, weight, bias2d)

    if M_pad != M:
        out = out[:M]
    if N_pad != N:
        out = out[:, :N]
    return out


@functools.partial(jax.jit,
                   static_argnames=("tubelet", "ph", "pw", "out_dtype"))
def _patch_embed_forward(x, conv_weight, conv_bias, *, tubelet, ph, pw,
                         out_dtype="float32"):
    B, C, T, H, W = x.shape
    Tp, Hp, Wp = T // tubelet, H // ph, W // pw
    D = conv_weight.shape[0]

    # Cast early so the materialized patchify transpose moves bf16 bytes; the
    # kernel then does one large contiguous (tm, K) bf16 read per step.
    # TODO(synk): larger structural win is doing the patchify inside the kernel
    # (memory_space=pl.ANY + manual make_async_copy of contiguous W-strips),
    # dropping a full activation HBM round trip; kept materialized here.
    xb = x.astype(jnp.bfloat16)
    xp = xb.reshape(B, C, Tp, tubelet, Hp, ph, Wp, pw)
    xp = xp.transpose(0, 2, 4, 6, 1, 3, 5, 7)       # (B,Tp,Hp,Wp,C,tub,ph,pw)
    patches = xp.reshape(B * Tp * Hp * Wp, C * tubelet * ph * pw)

    # Conv3d weight (D, C, tub, ph, pw) -> (K, D); same reduction order.
    w = conv_weight.reshape(D, -1).T.astype(jnp.bfloat16)

    out = _patch_proj(patches, w, conv_bias.astype(jnp.float32),
                      jnp.dtype(out_dtype))          # (M, D)

    # PyTorch: conv -> (B, D, Tp, Hp, Wp) -> flatten(3) -> permute(0,2,3,1)
    return out.reshape(B, Tp, Hp * Wp, D)


class PatchEmbedPallas:
    """3D Image to Patch Embedding (Conv3d with kernel==stride), Pallas matmul.

    Note: activations/weights are computed in bf16 with f32 accumulation, so
    results differ from a true f32 PyTorch Conv3d at ~1e-2 level.
    """

    def __init__(self, img_size=16, patch_size=8, in_chans=4, embed_dim=32,
                 num_frames=2, tubelet_size=1, key=None, out_dtype="float32"):
        self.img_size = (img_size, img_size)
        self.patch_size = (patch_size, patch_size)
        self.tubelet_size = tubelet_size
        self.in_chans = in_chans
        self.embed_dim = embed_dim
        self.out_dtype = out_dtype
        self.grid_size = (num_frames // tubelet_size,
                          img_size // patch_size,
                          img_size // patch_size)
        self.num_patches = (self.grid_size[0] * self.grid_size[1]
                            * self.grid_size[2])

        if key is None:
            key = jax.random.PRNGKey(0)
        kw, kb = jax.random.split(key)
        # Conv3d weight: (embed_dim, in_chans, tubelet, p, p); bias: (embed_dim,)
        fan_in = in_chans * tubelet_size * patch_size * patch_size
        bound = 1.0 / (fan_in ** 0.5)
        self.conv_weight = jax.random.uniform(
            kw, (embed_dim, in_chans, tubelet_size, patch_size, patch_size),
            jnp.float32, -bound, bound)
        self.conv_bias = jax.random.uniform(
            kb, (embed_dim,), jnp.float32, -bound, bound)
        # norm_layer=None in the reference default -> nn.Identity()

    def __call__(self, x):
        # x: (B, C, T, H, W) f32 -> (B, T', H'*W', embed_dim)
        return _patch_embed_forward(
            x, self.conv_weight, self.conv_bias,
            tubelet=self.tubelet_size,
            ph=self.patch_size[0], pw=self.patch_size[1],
            out_dtype=self.out_dtype)


def _reference(x, weight, bias):
    """Pure-JAX reference via conv_general_dilated for sanity checking."""
    out = jax.lax.conv_general_dilated(
        x, weight,
        window_strides=weight.shape[2:],
        padding="VALID",
        dimension_numbers=("NCDHW", "OIDHW", "NCDHW"),
    ) + bias.reshape(1, -1, 1, 1, 1)
    B, D, Tp, Hp, Wp = out.shape
    return out.reshape(B, D, Tp, Hp * Wp).transpose(0, 2, 3, 1)


if __name__ == "__main__":
    key = jax.random.PRNGKey(0)
    k_x, k_p = jax.random.split(key)

    # Small shapes: batch=2, in_chans=4, frames=2, spatial=16, patch=8, dim=32
    B, C, T, H, W = 2, 4, 2, 16, 16
    x = jax.random.normal(k_x, (B, C, T, H, W), jnp.float32)

    mod = PatchEmbedPallas(img_size=16, patch_size=8, in_chans=4,
                           embed_dim=32, num_frames=2, tubelet_size=1, key=k_p)

    y = jax.block_until_ready(mod(x))

    # Reference on bf16-rounded inputs (kernel computes bf16 x bf16 -> f32 acc).
    xq = x.astype(jnp.bfloat16).astype(jnp.float32)
    wq = mod.conv_weight.astype(jnp.bfloat16).astype(jnp.float32)
    y_ref = _reference(xq, wq, mod.conv_bias)

    assert y.shape == (B, 2, 4, 32), y.shape
    assert jnp.allclose(y, y_ref, atol=1e-2, rtol=1e-2), \
        float(jnp.max(jnp.abs(y - y_ref)))

    print("KERNEL_OK")
</pallas_src>

<mosaic_0001>
module attributes {stable_mosaic.version = 11 : i64} {
  func.func @_proj_kernel(%arg0: i32, %arg1: memref<16x256xbf16, #tpu.memory_space<vmem>>, %arg2: memref<256x128xbf16, #tpu.memory_space<vmem>>, %arg3: memref<1x128xf32, #tpu.memory_space<vmem>>, %arg4: memref<16x128xf32, #tpu.memory_space<vmem>>) attributes {dimension_semantics = [#tpu.dimension_semantics<parallel>], iteration_bounds = array<i64: 1>, scalar_prefetch = 0 : i64, scratch_operands = 0 : i64, tpu.core_type = #tpu.core_type<tc>, window_params = [{transform_indices = @transform_0, window_bounds = array<i64: 16, 256>}, {pipeline_mode = #tpu.pipeline_mode<synchronous>, transform_indices = @transform_1, window_bounds = array<i64: 256, 128>}, {pipeline_mode = #tpu.pipeline_mode<synchronous>, transform_indices = @transform_2, window_bounds = array<i64: 1, 128>}, {transform_indices = @transform_3, window_bounds = array<i64: 16, 128>}]} {
    %c0 = arith.constant 0 : index
    %c0_0 = arith.constant 0 : index
    %0 = vector.load %arg1[%c0, %c0_0] : memref<16x256xbf16, #tpu.memory_space<vmem>>, vector<16x256xbf16>
    %c0_1 = arith.constant 0 : index
    %c0_2 = arith.constant 0 : index
    %1 = vector.load %arg2[%c0_1, %c0_2] : memref<256x128xbf16, #tpu.memory_space<vmem>>, vector<256x128xbf16>
    %cst = arith.constant dense<0.000000e+00> : vector<16x128xf32>
    %2 = tpu.matmul %0, %1, %cst {dimension_numbers = #tpu.dot_dimension_numbers<[1], [0], [0], [1], [0, 0, 1, 1], [], []>} : vector<16x256xbf16>, vector<256x128xbf16>, vector<16x128xf32> -> vector<16x128xf32>
    %c0_3 = arith.constant 0 : index
    %c0_4 = arith.constant 0 : index
    %3 = vector.load %arg3[%c0_3, %c0_4] : memref<1x128xf32, #tpu.memory_space<vmem>>, vector<1x128xf32>
    %4 = vector.broadcast %3 : vector<1x128xf32> to vector<16x128xf32>
    %5 = arith.addf %2, %4 : vector<16x128xf32>
    %c0_5 = arith.constant 0 : index
    %c0_6 = arith.constant 0 : index
    %6 = vector.load %arg4[%c0_5, %c0_6] : memref<16x128xf32, #tpu.memory_space<vmem>>, vector<16x128xf32>
    tpu.vector_store %arg4[%c0_5, %c0_6], %5 {strides = array<i32>} : memref<16x128xf32, #tpu.memory_space<vmem>>, vector<16x128xf32>,
    return
  }
  func.func @transform_0(%arg0: i32) -> (i32, i32) {
    %c0_i32 = arith.constant 0 : i32
    %c0_i32_0 = arith.constant 0 : i32
    return %arg0, %c0_i32 : i32, i32
  }
  func.func @transform_1(%arg0: i32) -> (i32, i32) {
    %c0_i32 = arith.constant 0 : i32
    %c0_i32_0 = arith.constant 0 : i32
    %c0_i32_1 = arith.constant 0 : i32
    return %c0_i32, %c0_i32_0 : i32, i32
  }
  func.func @transform_2(%arg0: i32) -> (i32, i32) {
    %c0_i32 = arith.constant 0 : i32
    %c0_i32_0 = arith.constant 0 : i32
    %c0_i32_1 = arith.constant 0 : i32
    return %c0_i32, %c0_i32_0 : i32, i32
  }
  func.func @transform_3(%arg0: i32) -> (i32, i32) {
    %c0_i32 = arith.constant 0 : i32
    %c0_i32_0 = arith.constant 0 : i32
    return %arg0, %c0_i32 : i32, i32
  }
}

</mosaic_0001>

<bundles_post_ra>
// kernel: _patch_embed_forward.2
= control target key start
LH: loop header
LB: loop body
LE: loop exit
PB: predicated region body
PF: predicated region fallthrough
CT: control target
= control target key end

     0   :  { %s1328_s0 = inlined_call_operand.vmem [shape: bf16[16,256], index: 0, kind: input, shape index: {}]   ;;  %s1329_s1 = inlined_call_operand.vmem [shape: bf16[256,32], index: 1, kind: input, shape index: {}]   ;;  %s1330_s2 = inlined_call_operand.<no memory space> [shape: bf16[], index: 2, kind: input, shape index: {}]   ;;  %s1331_s3 = inlined_call_operand.vmem [shape: f32[32], index: 3, kind: input, shape index: {}]   ;;  %s1332_s4 = inlined_call_operand.<no memory space> [shape: f32[], index: 4, kind: input, shape index: {}]   ;;  %s1333_s5 = inlined_call_operand.hbm [shape: f32[16,128], index: 5, kind: output, shape index: {}]  }
   0x1   :  { %v10_v0 = vstv %s1330_s2  ;;  %v15_v1 = vstv %s1332_s4 }
   0x2   :  { %v1129_v2 = vunpack.i.l.bf16 %v10_v0 }
   0x3   :  { %v35_v3 = vlaneseq  ;;  %v1001_v4 = vld [vmem:[%s1329_s1 + $0x78] sm:$0xff]   ;;  %v999_v6 = vld [vmem:[%s1329_s1 + $0x70] sm:$0xff]   ;;  %v997_v12 = vld [vmem:[%s1329_s1 + $0x68] sm:$0xff]   ;;  %v1089_v30 = vmov 0.0  }
   0x4   :  { %v985_v5 = vld [vmem:[%s1329_s1 + $0x38] sm:$0xff]   ;;  %v722_v7 = vunpack.c.l.bf16 %v1001_v4  ;;  %v745_v8 = vunpack.c.h.bf16 %v1001_v4  ;;  %v983_v11 = vld [vmem:[%s1329_s1 + $0x30] sm:$0xff]   ;;  %v981_v13 = vld [vmem:[%s1329_s1 + $0x28] sm:$0xff]   ;;  %v676_v15 = vunpack.c.l.bf16 %v999_v6  ;;  %v699_v16 = vunpack.c.h.bf16 %v999_v6 }
   0x5   :  { %v354_v9 = vunpack.c.l.bf16 %v985_v5  ;;  %v377_v10 = vunpack.c.h.bf16 %v985_v5  ;;  %v1150_v14 = vand.u32 127, %v35_v3  ;;  %v308_v17 = vunpack.c.l.bf16 %v983_v11  ;;  %v995_v18 = vld [vmem:[%s1329_s1 + $0x60] sm:$0xff]  }
   0x6   :  { %v331_v19 = vunpack.c.h.bf16 %v983_v11  ;;  %v630_v20 = vunpack.c.l.bf16 %v997_v12  ;;  %v653_v21 = vunpack.c.h.bf16 %v997_v12  ;;  %v262_v22 = vunpack.c.l.bf16 %v981_v13  ;;  %v1066_v35 = vld [vmem:[%s1328_s0 + $0x4] ss:$8 sps:$4 sm:$0xff]  }
   0x7   :  { %vm38_vm0 = vcmp.lt.s32.totalorder %v1150_v14, 32  ;;  %v285_v23 = vunpack.c.h.bf16 %v981_v13  ;;  %v584_v24 = vunpack.c.l.bf16 %v995_v18  ;;  %v607_v25 = vunpack.c.h.bf16 %v995_v18 }
   0x8   :  { %v728_v26 = vsel %vm38_vm0, %v722_v7, %v1129_v2  ;;  %v751_v27 = vsel %vm38_vm0, %v745_v8, %v1129_v2  ;;  %v360_v28 = vsel %vm38_vm0, %v354_v9, %v1129_v2  ;;  %v383_v29 = vsel %vm38_vm0, %v377_v10, %v1129_v2 }
   0x9   :  { %v730_v31 = vpack.c.bf16 %v1089_v30, %v728_v26  ;;  %v753_v32 = vpack.c.bf16 %v1089_v30, %v751_v27  ;;  %v362_v33 = vpack.c.bf16 %v1089_v30, %v360_v28  ;;  %v385_v34 = vpack.c.bf16 %v1089_v30, %v383_v29 }
   0xa   :  { %16 = vsyncpa [#allocation13], 0  ;;  %v682_v36 = vsel %vm38_vm0, %v676_v15, %v1129_v2  ;;  %v705_v37 = vsel %vm38_vm0, %v699_v16, %v1129_v2  ;;  %v314_v38 = vsel %vm38_vm0, %v308_v17, %v1129_v2  ;;  %v337_v39 = vsel %vm38_vm0, %v331_v19, %v1129_v2  ;;  %v979_v44 = vld [vmem:[%s1329_s1 + $0x20] sm:$0xff]   ;;  %945 = vmatprep.mubr.bf16.mxu0 %v1066_v35  ;;  %v993_v49 = vld [vmem:[%s1329_s1 + $0x58] sm:$0xff]  }
   0xb   :  { %733 = vst [vmem:[#allocation14 + $0x78] sm:$0xf] %v730_v31  ;;  %756 = vst [vmem:[#allocation14 + $0x7c] sm:$0xf] %v753_v32  ;;  %v684_v40 = vpack.c.bf16 %v1089_v30, %v682_v36  ;;  %v707_v41 = vpack.c.bf16 %v1089_v30, %v705_v37  ;;  %v316_v42 = vpack.c.bf16 %v1089_v30, %v314_v38  ;;  %v977_v54 = vld [vmem:[%s1329_s1 + $0x18] sm:$0xff]   ;;  %v216_v57 = vunpack.c.l.bf16 %v979_v44  ;;  %v991_v6 = vld [vmem:[%s1329_s1 + $0x50] sm:$0xff]  }
   0xc   :  { %365 = vst [vmem:[#allocation14 + $0x38] sm:$0xf] %v362_v33  ;;  %388 = vst [vmem:[#allocation14 + $0x3c] sm:$0xf] %v385_v34  ;;  %v339_v43 = vpack.c.bf16 %v1089_v30, %v337_v39  ;;  %v636_v45 = vsel %vm38_vm0, %v630_v20, %v1129_v2  ;;  %v659_v46 = vsel %vm38_vm0, %v653_v21, %v1129_v2  ;;  %v239_v58 = vunpack.c.h.bf16 %v979_v44  ;;  %v975_v11 = vld [vmem:[%s1329_s1 + $0x10] sm:$0xff]   ;;  %v989_v12 = vld [vmem:[%s1329_s1 + $0x48] sm:$0xff]  }
   0xd   :  { %v268_v47 = vsel %vm38_vm0, %v262_v22, %v1129_v2  ;;  %v291_v48 = vsel %vm38_vm0, %v285_v23, %v1129_v2  ;;  %687 = vst [vmem:[#allocation14 + $0x70] sm:$0xf] %v684_v40  ;;  %710 = vst [vmem:[#allocation14 + $0x74] sm:$0xf] %v707_v41  ;;  %v638_v50 = vpack.c.bf16 %v1089_v30, %v636_v45  ;;  %v538_v61 = vunpack.c.l.bf16 %v993_v49  ;;  %v973_v13 = vld [vmem:[%s1329_s1 + $0x8] sm:$0xff]   ;;  %v987_v31 = vld [vmem:[%s1329_s1 + $0x40] sm:$0xff]  }
   0xe   :  { %319 = vst [vmem:[#allocation14 + $0x30] sm:$0xf] %v316_v42  ;;  %342 = vst [vmem:[#allocation14 + $0x34] sm:$0xf] %v339_v43  ;;  %v661_v51 = vpack.c.bf16 %v1089_v30, %v659_v46  ;;  %v270_v52 = vpack.c.bf16 %v1089_v30, %v268_v47  ;;  %v293_v53 = vpack.c.bf16 %v1089_v30, %v291_v48  ;;  %v561_v62 = vunpack.c.h.bf16 %v993_v49  ;;  %v32_v46 = vld [vmem:[%s1329_s1] sm:$0xff]  }
   0xf   :  { %v590_v55 = vsel %vm38_vm0, %v584_v24, %v1129_v2  ;;  %v613_v56 = vsel %vm38_vm0, %v607_v25, %v1129_v2  ;;  %641 = vst [vmem:[#allocation14 + $0x68] sm:$0xf] %v638_v50  ;;  %v222_v63 = vsel %vm38_vm0, %v216_v57, %v1129_v2  ;;  %v245_v0 = vsel %vm38_vm0, %v239_v58, %v1129_v2 }
  0x10   :  { %664 = vst [vmem:[#allocation14 + $0x6c] sm:$0xf] %v661_v51  ;;  %273 = vst [vmem:[#allocation14 + $0x28] sm:$0xf] %v270_v52  ;;  %v592_v59 = vpack.c.bf16 %v1089_v30, %v590_v55  ;;  %v615_v60 = vpack.c.bf16 %v1089_v30, %v613_v56  ;;  %v170_v4 = vunpack.c.l.bf16 %v977_v54  ;;  %v193_v5 = vunpack.c.h.bf16 %v977_v54 }
  0x11   :  { %296 = vst [vmem:[#allocation14 + $0x2c] sm:$0xf] %v293_v53  ;;  %v224_v7 = vpack.c.bf16 %v1089_v30, %v222_v63  ;;  %v247_v8 = vpack.c.bf16 %v1089_v30, %v245_v0  ;;  %v544_v9 = vsel %vm38_vm0, %v538_v61, %v1129_v2  ;;  %v567_v10 = vsel %vm38_vm0, %v561_v62, %v1129_v2 }
  0x12   :  { %595 = vst [vmem:[#allocation14 + $0x60] sm:$0xf] %v592_v59  ;;  %618 = vst [vmem:[#allocation14 + $0x64] sm:$0xf] %v615_v60  ;;  %v1048_v15 = vld [vmem:[#allocation14 + $0x78] sm:$0xff]   ;;  %v546_v16 = vpack.c.bf16 %v1089_v30, %v544_v9  ;;  %v569_v17 = vpack.c.bf16 %v1089_v30, %v567_v10  ;;  %v176_v18 = vsel %vm38_vm0, %v170_v4, %v1129_v2  ;;  %v492_v23 = vunpack.c.l.bf16 %v991_v6 }
  0x13   :  { %v199_v19 = vsel %vm38_vm0, %v193_v5, %v1129_v2  ;;  %v1049_v20 = vld [vmem:[#allocation14 + $0x38] sm:$0xff]   ;;  %227 = vst [vmem:[#allocation14 + $0x20] sm:$0xf] %v224_v7  ;;  %250 = vst [vmem:[#allocation14 + $0x24] sm:$0xf] %v247_v8  ;;  %v178_v21 = vpack.c.bf16 %v1089_v30, %v176_v18  ;;  %v515_v24 = vunpack.c.h.bf16 %v991_v6  ;;  %1022 = vmatprep.subr.bf16.mxu0 %v1048_v15  ;;  %v124_v26 = vunpack.c.l.bf16 %v975_v11 }
  0x14   :  { %v201_v22 = vpack.c.bf16 %v1089_v30, %v199_v19  ;;  %v1050_v25 = vld [vmem:[#allocation14 + $0x70] sm:$0xff]   ;;  %549 = vst [vmem:[#allocation14 + $0x58] sm:$0xf] %v546_v16  ;;  %572 = vst [vmem:[#allocation14 + $0x5c] sm:$0xf] %v569_v17  ;;  %v147_v27 = vunpack.c.h.bf16 %v975_v11  ;;  %v446_v28 = vunpack.c.l.bf16 %v989_v12  ;;  %v469_v29 = vunpack.c.h.bf16 %v989_v12  ;;  %1023 = vmatpush3.bf16.msra.mxu0 %v1049_v20 }
  0x15   :  { %v1051_v32 = vld [vmem:[#allocation14 + $0x30] sm:$0xff]   ;;  %181 = vst [vmem:[#allocation14 + $0x18] sm:$0xf] %v178_v21  ;;  %v498_v33 = vsel %vm38_vm0, %v492_v23, %v1129_v2  ;;  %v521_v34 = vsel %vm38_vm0, %v515_v24, %v1129_v2  ;;  %v78_v35 = vunpack.c.l.bf16 %v973_v13  ;;  %v101_v36 = vunpack.c.h.bf16 %v973_v13  ;;  %1024 = vmatprep.subr.bf16.mxu0 %v1050_v25 }
  0x16   :  { %204 = vst [vmem:[#allocation14 + $0x1c] sm:$0xf] %v201_v22  ;;  %v500_v38 = vpack.c.bf16 %v1089_v30, %v498_v33  ;;  %v523_v39 = vpack.c.bf16 %v1089_v30, %v521_v34  ;;  %v130_v40 = vsel %vm38_vm0, %v124_v26, %v1129_v2  ;;  %v153_v41 = vsel %vm38_vm0, %v147_v27, %v1129_v2  ;;  %v1064_v12 = vld [vmem:[%s1328_s0] ss:$8 sps:$4 sm:$0xff]   ;;  %s1090_s0 = smov [#allocation12]  }
  0x17   :  { %v1052_v37 = vld [vmem:[#allocation14 + $0x68] sm:$0xff]   ;;  %v132_v42 = vpack.c.bf16 %v1089_v30, %v130_v40  ;;  %v155_v43 = vpack.c.bf16 %v1089_v30, %v153_v41  ;;  %v452_v44 = vsel %vm38_vm0, %v446_v28, %v1129_v2  ;;  %v475_v45 = vsel %vm38_vm0, %v469_v29, %v1129_v2  ;;  %v757_v13 = vld [vmem:[%s1331_s3] sm:$0x1]  ;;  %s961_s9 = sshll.u32 %s1090_s0, 4  ;;  %s962_s9 = int_to_ptr.vmem [resolvable:$true] %s961_s9 }
  0x18   :  { %503 = vst [vmem:[#allocation14 + $0x50] sm:$0xf] %v500_v38  ;;  %526 = vst [vmem:[#allocation14 + $0x54] sm:$0xf] %v523_v39  ;;  %v454_v47 = vpack.c.bf16 %v1089_v30, %v452_v44  ;;  %v477_v48 = vpack.c.bf16 %v1089_v30, %v475_v45  ;;  %v84_v49 = vsel %vm38_vm0, %v78_v35, %v1129_v2  ;;  %1025 = vmatpush3.bf16.msra.mxu0 %v1051_v32  ;;  %v1053_v51 = vld [vmem:[#allocation14 + $0x28] sm:$0xff]   ;;  %s1067_s3 = scalar_lea.vmem %s962_s9, 256  ;;  %p1072_p1 = scmp.lt.s32.totalorder %s962_s9, %s962_s9 }
  0x19   :  { %v107_v50 = vsel %vm38_vm0, %v101_v36, %v1129_v2  ;;  %135 = vst [vmem:[#allocation14 + $0x10] sm:$0xf] %v132_v42  ;;  %158 = vst [vmem:[#allocation14 + $0x14] sm:$0xf] %v155_v43  ;;  %v86_v52 = vpack.c.bf16 %v1089_v30, %v84_v49  ;;  %v400_v54 = vunpack.c.l.bf16 %v987_v31  ;;  %v423_v55 = vunpack.c.h.bf16 %v987_v31  ;;  %1026 = vmatprep.subr.bf16.mxu0 %v1052_v37  ;;  %v1054_v56 = vld [vmem:[#allocation14 + $0x60] sm:$0xff]   ;;  %p1068_p0 = scmp.ne.s32.totalorder %s962_s9, %s1067_s3  ;;  %p1073_p2 = scmp.lt.s32.totalorder %s1067_s3, %s1067_s3 }
  0x1a   :  { %v109_v53 = vpack.c.bf16 %v1089_v30, %v107_v50  ;;  %457 = vst [vmem:[#allocation14 + $0x48] sm:$0xf] %v454_v47  ;;  %480 = vst [vmem:[#allocation14 + $0x4c] sm:$0xf] %v477_v48  ;;  %v33_v57 = vunpack.c.l.bf16 %v32_v46  ;;  %v55_v58 = vunpack.c.h.bf16 %v32_v46  ;;  %v1055_v4 = vld [vmem:[#allocation14 + $0x20] sm:$0xff]   ;;  %vm760_vm1 = vcmp.lt.s32.totalorder %v35_v3, 32 }
  0x1b   :  { %89 = vst [vmem:[#allocation14 + $0x8] sm:$0xf] %v86_v52  ;;  %v406_v59 = vsel %vm38_vm0, %v400_v54, %v1129_v2  ;;  %v429_v60 = vsel %vm38_vm0, %v423_v55, %v1129_v2  ;;  %v1056_v7 = vld [vmem:[#allocation14 + $0x58] sm:$0xff]   ;;  %v761_v15 = vsel %vm760_vm1, %v757_v13, %v15_v1  ;;  %p1074_p3 = por %p1073_p2, %p1072_p1 }
  0x1c   :  { %112 = vst [vmem:[#allocation14 + $0xc] sm:$0xf] %v109_v53  ;;  %v408_v61 = vpack.c.bf16 %v1089_v30, %v406_v59  ;;  %v431_v62 = vpack.c.bf16 %v1089_v30, %v429_v60  ;;  %v39_v63 = vsel %vm38_vm0, %v33_v57, %v1129_v2  ;;  %v61_v0 = vsel %vm38_vm0, %v55_v58, %v1129_v2 }
  0x1d   :  { %1027 = vmatpush3.bf16.msra.mxu0 %v1053_v51  ;;  %v40_v5 = vpack.c.bf16 %v1089_v30, %v39_v63  ;;  %v63_v6 = vpack.c.bf16 %v1089_v30, %v61_v0  ;;  %v1057_v8 = vld [vmem:[#allocation14 + $0x18] sm:$0xff]   ;;  %764 = vst [vmem:[#allocation15] sm:$0x1] %v761_v15  ;;  %p1075_p4 = pnand %p1074_p3, %p1068_p0 }
  0x1e   :  { %1028 = vmatprep.subr.bf16.mxu0 %v1054_v56  ;;  %411 = vst [vmem:[#allocation14 + $0x40] sm:$0xf] %v408_v61  ;;  %434 = vst [vmem:[#allocation14 + $0x44] sm:$0xf] %v431_v62 }
  0x1f   :  { %43 = vst [vmem:[#allocation14] sm:$0xf] %v40_v5  ;;  %66 = vst [vmem:[#allocation14 + $0x4] sm:$0xf] %v63_v6  ;;  %v1058_v9 = vld [vmem:[#allocation14 + $0x50] sm:$0xff]  }
  0x20   :  { %v1059_v10 = vld [vmem:[#allocation14 + $0x10] sm:$0xff]  }
  0x21   :  { %1029 = vmatpush3.bf16.msra.mxu0 %v1055_v4  ;;  %v1060_v2 = vld [vmem:[#allocation14 + $0x48] sm:$0xff]  }
  0x22   :  { %1030 = vmatprep.subr.bf16.mxu0 %v1056_v7 }
  0x23   :  { %v1061_v14 = vld [vmem:[#allocation14 + $0x8] sm:$0xff]  }
  0x24   :  { %v1003_v17 = vld [vmem:[#allocation15] ss:$0 sm:$0xff] }
  0x25   :  { %1031 = vmatpush3.bf16.msra.mxu0 %v1057_v8  ;;  %v1062_v11 = vld [vmem:[#allocation14 + $0x40] sm:$0xff]  }
  0x26   :  { %1032 = vmatprep.subr.bf16.mxu0 %v1058_v9  ;;  %v1063_v30 = vld [vmem:[#allocation14] sm:$0xff]  }
  0x29   :  { %1033 = vmatpush3.bf16.msra.mxu0 %v1059_v10 }
  0x2a   :  { %1034 = vmatprep.subr.bf16.mxu0 %v1060_v2 }
  0x2d   :  { %1035 = vmatpush3.bf16.msra.mxu0 %v1061_v14 }
  0x2e   :  { %1036 = vmatprep.subr.bf16.mxu0 %v1062_v11 }
  0x31   :  { %1037 = vmatpush3.bf16.msra.mxu0 %v1063_v30 }
  0x34   :  { %946 = vmatmul.mubr.bf16.vlgmr.msra.gmra.mxu0 %v1064_v12 }
  0xf4   :  { %v1038_v16 = vpop.f32.mrf.mxu0 }
  0xf6   :  { %v1039_v18 = vpop.f32.mrf.mxu0 }
  0xf7   :  { %v1040_v19 = vadd.f32 %v1039_v18, %v1038_v16 }
  0xf8   :  { %v1041_v20 = vpop.f32.mrf.mxu0 }
  0xf9   :  { %v948_v21 = vadd.f32 %v1040_v19, %v1003_v17 }
  0xfa   :  { %v1042_v22 = vpop.f32.mrf.mxu0 }
  0xfb   :  { %954 = vst [vmem:[#allocation12] sm:$0xff] %v948_v21  ;;  %v1043_v23 = vadd.f32 %v1042_v22, %v1041_v20 }
  0xfd   :  { %v951_v24 = vadd.f32 %v1043_v23, %v1003_v17 }
  0xff   :  { %955 = vst [vmem:[#allocation12 + $0x8] sm:$0xff] %v951_v24 }
 0x100   :  { %1078 = shalt.err (!%p1075_p4)
}
 0x101   :  { %s1091_s4 = smov 128   ;;  %s1092_s10 = smov 8  }
 0x102   :  { %967 = dma.vmem_to_hbm [thread:$0]  %s962_s9, 256, %s1333_s5, [#allocation13], %s1091_s4, %s1091_s4, %s1092_s10  }
 0x103   :  { %1087 = dma.done.wait [#allocation13], 256  }
 0x104   :  { %1088 = vsyncadd [#allocation13], 4294967040 }
 0x105   :  { %971 = vsyncpa [#allocation13], 1 }

</bundles_post_ra>
